<compile_context>
chip_gen: v5e
topology: v5e:2x2
jax: 0.10.0
libtpu: 0.0.40
codegen_flags: <defaults>
</compile_context>

<pallas_src>
import jax
import jax.numpy as jnp
from jax.experimental import pallas as pl
from jax.experimental.pallas import tpu as pltpu

MODEL_CONFIG = dict(
    kernel_list=[2, 4, 6],
    stride_size=1,
    ma_output_size=8,
    nnodes1=8,
    nnodes2=8,
    ma_combine=2,   # implied by fc1 in-features = nnodes2*ma_output_size*(len(kernel_list)-1)
    dropout=0.0,
)

USE_BF16_MXU = True   # bf16 operands / f32 accumulation for the two big dots

_VMEM = pl.BlockSpec(memory_space=pltpu.MemorySpace.VMEM)


# ---------------------------------------------------------------------------
# Fused Pallas kernel: whole forward pass, everything resident in VMEM
# ---------------------------------------------------------------------------
def _leaky_relu(x):
    return jnp.where(x > 0, x, 0.2 * x)           # nn.LeakyReLU(0.2)


def _ln_normalize(x, eps=1e-5):                    # torch LayerNorm defaults,
    mu = jnp.mean(x, axis=-1, keepdims=True)       # gamma/beta folded into the
    var = jnp.mean((x - mu) ** 2, axis=-1, keepdims=True)  # next linear layer
    return (x - mu) * jax.lax.rsqrt(var + eps)


def _fused_forward_kernel(x_ref, w01_ref, b01_ref,
                          w2_ref, b2_ref, w3_ref, b3_ref, o_ref):
    # conv front-end + fc1 folded into one affine map (dropout1 = identity).
    h = (jnp.dot(x_ref[...].astype(w01_ref.dtype), w01_ref[...],
                 preferred_element_type=jnp.float32) + b01_ref[...])   # (B, 512)
    h = _ln_normalize(_leaky_relu(h))                                  # norm1 (affine folded)
    # dropout2 = identity; ln1 gamma/beta folded into W2'/b2'.
    h = (jnp.dot(h.astype(w2_ref.dtype), w2_ref[...],
                 preferred_element_type=jnp.float32) + b2_ref[...])    # (B, 128)
    h = _ln_normalize(_leaky_relu(h))                                  # norm2 (affine folded)
    # fc3 (ln2 gamma/beta folded in): (B, 4) -> one masked store, negligible.
    o_ref[...] = (jnp.dot(h, w3_ref[...], preferred_element_type=jnp.float32)
                  + b3_ref[...])


def manet_forward(fused, inputs, cfg):
    """inputs: (B, 5, T) NCL layout (matches PyTorch Conv1d). Returns (B, 4)."""
    B, Cin, T = inputs.shape
    Lmax = max(cfg["kernel_list"]) + cfg["stride_size"] * (cfg["ma_output_size"] - 1)
    # Only the last Lmax timesteps are ever read by any conv branch.
    xflat = inputs[:, :, T - Lmax:].reshape(B, Cin * Lmax).astype(jnp.float32)
    args = (
        xflat,
        fused["w01"], fused["b01"],
        fused["w2"], fused["b2"],
        fused["w3"], fused["b3"],
    )
    return pl.pallas_call(
        _fused_forward_kernel,
        out_shape=jax.ShapeDtypeStruct((B, 4), jnp.float32),
        in_specs=[_VMEM] * len(args),
        out_specs=_VMEM,
    )(*args)


# ---------------------------------------------------------------------------
# Host-side (one-time) weight folding
# ---------------------------------------------------------------------------
def _conv_frontend_reference(x, params, cfg):
    """Plain-JAX reference of conv1 branches -> stack -> conv2(1xM, no bias)
    -> flatten, with exact torch semantics.  Affine in x; used once to fold
    the whole conv front-end into a single matrix + bias, and for checking."""
    B, Cin, T = x.shape
    kernel_list = cfg["kernel_list"]
    stride = cfg["stride_size"]
    S = cfg["ma_output_size"]
    K = len(kernel_list)
    M = cfg["ma_combine"]
    C1, C2 = cfg["nnodes1"], cfg["nnodes2"]

    outs = []
    for i, k in enumerate(kernel_list):
        L = k + stride * (S - 1)                 # get_input_len
        x_i = x[:, :, T - L:]                    # inputs[..., -input_len[i]:]
        cols = jnp.stack(
            [x_i[:, :, s * stride: s * stride + k] for s in range(S)], axis=1
        ).reshape(B * S, Cin * k)
        w = params["conv1_w"][i].reshape(C1, Cin * k).T
        y = cols @ w + params["conv1_b"][i]
        outs.append(y.reshape(B, S, C1).transpose(0, 2, 1))           # (B, C1, S)
    stacked = jnp.stack(outs, axis=-1)                                # (B, C1, S, K)

    J = K - M + 1
    patches = jnp.stack([stacked[..., j:j + M] for j in range(J)], axis=3)
    patches = jnp.transpose(patches, (0, 2, 3, 1, 4)).reshape(B * S * J, C1 * M)
    y2 = patches @ params["conv2_w"].reshape(C2, C1 * M).T            # bias=False
    y2 = y2.reshape(B, S, J, C2).transpose(0, 3, 1, 2)                # (B, C2, S, J)
    return y2.reshape(B, C2 * S * J)                                  # torch.flatten


def fuse_params(params, cfg, use_bf16=USE_BF16_MXU):
    """Fold conv-front-end+fc1 into (w01, b01) and LayerNorm affines into the
    following linear layers.  All one-time, input-independent, host-side."""
    Cin = 5
    Lmax = max(cfg["kernel_list"]) + cfg["stride_size"] * (cfg["ma_output_size"] - 1)

    # 1) conv front-end -> single affine map (probe with zero + identity basis)
    zero = jnp.zeros((1, Cin, Lmax), jnp.float32)
    front_b = _conv_frontend_reference(zero, params, cfg)[0]                  # (F_in,)
    basis = jnp.eye(Cin * Lmax, dtype=jnp.float32).reshape(Cin * Lmax, Cin, Lmax)
    front_w = _conv_frontend_reference(basis, params, cfg) - front_b          # (Cin*Lmax, F_in)

    # 2) fold front-end into fc1 (dropout1 is identity at inference)
    w01 = front_w @ params["fc1_w"]                                           # (Cin*Lmax, 512)
    b01 = front_b @ params["fc1_w"] + params["fc1_b"]                         # (512,)

    # 3) fold ln1 gamma/beta into fc2, ln2 gamma/beta into fc3
    w2 = params["ln1_g"][:, None] * params["fc2_w"]                           # (512, 128)
    b2 = params["ln1_b"] @ params["fc2_w"] + params["fc2_b"]                  # (128,)
    w3 = params["ln2_g"][:, None] * params["fc3_w"]                           # (128, 4)
    b3 = params["ln2_b"] @ params["fc3_w"] + params["fc3_b"]                  # (4,)

    mxu_dt = jnp.bfloat16 if use_bf16 else jnp.float32
    return {
        "w01": w01.astype(mxu_dt), "b01": b01.reshape(1, -1),
        "w2": w2.astype(mxu_dt),   "b2": b2.reshape(1, -1),
        "w3": w3.astype(jnp.float32), "b3": b3.reshape(1, -1),
    }


def manet_fused_mirror(fused, inputs, cfg):
    """Plain-jnp mirror of the fused kernel math (bit-level design check)."""
    B, Cin, T = inputs.shape
    Lmax = max(cfg["kernel_list"]) + cfg["stride_size"] * (cfg["ma_output_size"] - 1)
    x = inputs[:, :, T - Lmax:].reshape(B, Cin * Lmax)
    h = jnp.dot(x.astype(fused["w01"].dtype), fused["w01"],
                preferred_element_type=jnp.float32) + fused["b01"]
    h = _ln_normalize(_leaky_relu(h))
    h = jnp.dot(h.astype(fused["w2"].dtype), fused["w2"],
                preferred_element_type=jnp.float32) + fused["b2"]
    h = _ln_normalize(_leaky_relu(h))
    return jnp.dot(h, fused["w3"], preferred_element_type=jnp.float32) + fused["b3"]


def manet_unfused_reference(params, inputs, cfg):
    """End-to-end f32 reference with the ORIGINAL (unfolded) parameters,
    mirroring the PyTorch forward exactly (dropout = identity)."""
    def layer_norm(x, g, b, eps=1e-5):
        mu = jnp.mean(x, axis=-1, keepdims=True)
        var = jnp.mean((x - mu) ** 2, axis=-1, keepdims=True)
        return (x - mu) * jax.lax.rsqrt(var + eps) * g + b
    flat = _conv_frontend_reference(inputs, params, cfg)
    h = flat @ params["fc1_w"] + params["fc1_b"]
    h = layer_norm(_leaky_relu(h), params["ln1_g"], params["ln1_b"])
    h = h @ params["fc2_w"] + params["fc2_b"]
    h = layer_norm(_leaky_relu(h), params["ln2_g"], params["ln2_b"])
    return h @ params["fc3_w"] + params["fc3_b"]


# ---------------------------------------------------------------------------
# Parameter init (deterministic, xavier-normal-style weights, zero biases)
# ---------------------------------------------------------------------------
def init_params(key, cfg):
    kernel_list = cfg["kernel_list"]
    K = len(kernel_list)
    C1, C2 = cfg["nnodes1"], cfg["nnodes2"]
    M, S = cfg["ma_combine"], cfg["ma_output_size"]
    Cin = 5
    ks = jax.random.split(key, K + 4)

    def xavier(k, shape, fan_in, fan_out):
        std = (2.0 / (fan_in + fan_out)) ** 0.5
        return (std * jax.random.normal(k, shape)).astype(jnp.float32)

    params = {}
    params["conv1_w"] = [
        xavier(ks[i], (C1, Cin, kernel_list[i]),
               Cin * kernel_list[i], C1 * kernel_list[i])
        for i in range(K)
    ]
    params["conv1_b"] = [jnp.zeros((C1,), jnp.float32) for _ in range(K)]
    params["conv2_w"] = xavier(ks[K], (C2, C1, 1, M), C1 * M, C2 * M)  # bias=False

    F_in = C2 * S * (K - M + 1)   # == nnodes2 * ma_output_size * (len(kernel_list)-1)
    params["fc1_w"] = xavier(ks[K + 1], (F_in, 512), F_in, 512)
    params["fc1_b"] = jnp.zeros((512,), jnp.float32)
    params["ln1_g"] = jnp.ones((512,), jnp.float32)
    params["ln1_b"] = jnp.zeros((512,), jnp.float32)
    params["fc2_w"] = xavier(ks[K + 2], (512, 128), 512, 128)
    params["fc2_b"] = jnp.zeros((128,), jnp.float32)
    params["ln2_g"] = jnp.ones((128,), jnp.float32)
    params["ln2_b"] = jnp.zeros((128,), jnp.float32)
    params["fc3_w"] = xavier(ks[K + 3], (128, 4), 128, 4)
    params["fc3_b"] = jnp.zeros((4,), jnp.float32)
    return params


# ---------------------------------------------------------------------------
if __name__ == "__main__":
    key = jax.random.PRNGKey(0)
    param_key, data_key = jax.random.split(key)

    cfg = MODEL_CONFIG
    params = init_params(param_key, cfg)
    fused = fuse_params(params, cfg)           # one-time host-side weight fusion

    B, Cin, T = 2, 5, 16   # T >= max input_len = 6 + 1*(8-1) = 13
    inputs = jax.random.normal(data_key, (B, Cin, T), dtype=jnp.float32)

    fwd = jax.jit(lambda p, x: manet_forward(p, x, cfg))
    out = jax.block_until_ready(fwd(fused, inputs))
    assert out.shape == (B, 4), out.shape
    assert bool(jnp.all(jnp.isfinite(out)))

    # Sanity 1: fused Pallas kernel matches a plain-jnp mirror of the same
    # (folded) math — checks the kernel itself.
    mirror = manet_fused_mirror(fused, inputs, cfg)
    assert bool(jnp.allclose(out, mirror, atol=1e-2, rtol=1e-2))

    # Sanity 2: fused kernel matches the full unfused f32 reference of the
    # original PyTorch forward (conv branches, conv2, fc1..fc3, LayerNorms) —
    # checks that all the host-side folding preserves semantics (loose
    # tolerance because fc weights run in bf16 on the MXU).
    ref = manet_unfused_reference(params, inputs, cfg)
    assert bool(jnp.allclose(out, ref, atol=5e-2, rtol=5e-2))

    print("KERNEL_OK")
</pallas_src>

<mosaic_0001>
module attributes {stable_mosaic.version = 11 : i64} {
  func.func @_fused_forward_kernel(%arg0: memref<2x65xf32, #tpu.memory_space<vmem>>, %arg1: memref<65x512xbf16, #tpu.memory_space<vmem>>, %arg2: memref<1x512xf32, #tpu.memory_space<vmem>>, %arg3: memref<512x128xbf16, #tpu.memory_space<vmem>>, %arg4: memref<1x128xf32, #tpu.memory_space<vmem>>, %arg5: memref<128x4xf32, #tpu.memory_space<vmem>>, %arg6: memref<1x4xf32, #tpu.memory_space<vmem>>, %arg7: memref<2x4xf32, #tpu.memory_space<vmem>>) attributes {dimension_semantics = [], scalar_prefetch = 0 : i64, scratch_operands = 0 : i64, tpu.core_type = #tpu.core_type<tc>} {
    %c0 = arith.constant 0 : index
    %c0_0 = arith.constant 0 : index
    %0 = vector.load %arg0[%c0, %c0_0] : memref<2x65xf32, #tpu.memory_space<vmem>>, vector<2x65xf32>
    %1 = arith.truncf %0 : vector<2x65xf32> to vector<2x65xbf16>
    %c0_1 = arith.constant 0 : index
    %c0_2 = arith.constant 0 : index
    %2 = vector.load %arg1[%c0_1, %c0_2] : memref<65x512xbf16, #tpu.memory_space<vmem>>, vector<65x512xbf16>
    %cst = arith.constant dense<0.000000e+00> : vector<2x512xf32>
    %3 = tpu.matmul %1, %2, %cst {dimension_numbers = #tpu.dot_dimension_numbers<[1], [0], [0], [1], [0, 0, 1, 1], [], []>} : vector<2x65xbf16>, vector<65x512xbf16>, vector<2x512xf32> -> vector<2x512xf32>
    %c0_3 = arith.constant 0 : index
    %c0_4 = arith.constant 0 : index
    %4 = vector.load %arg2[%c0_3, %c0_4] : memref<1x512xf32, #tpu.memory_space<vmem>>, vector<1x512xf32>
    %5 = vector.broadcast %4 : vector<1x512xf32> to vector<2x512xf32>
    %6 = arith.addf %3, %5 : vector<2x512xf32>
    %cst_5 = arith.constant 0.000000e+00 : f32
    %7 = vector.broadcast %cst_5 : f32 to vector<2x512xf32>
    %8 = arith.cmpf ogt, %6, %7 : vector<2x512xf32>
    %cst_6 = arith.constant 2.000000e-01 : f32
    %9 = vector.broadcast %cst_6 : f32 to vector<2x512xf32>
    %10 = arith.mulf %9, %6 : vector<2x512xf32>
    %11 = arith.select %8, %6, %10 : vector<2x512xi1>, vector<2x512xf32>
    %cst_7 = arith.constant dense<0.000000e+00> : vector<2xf32>
    %12 = vector.multi_reduction <add>, %11, %cst_7 [1] : vector<2x512xf32> to vector<2xf32>
    %13 = vector.shape_cast %12 : vector<2xf32> to vector<2x1xf32>
    %cst_8 = arith.constant 5.120000e+02 : f32
    %14 = vector.broadcast %cst_8 : f32 to vector<2x1xf32>
    %15 = arith.divf %13, %14 : vector<2x1xf32>
    %16 = vector.broadcast %15 : vector<2x1xf32> to vector<2x512xf32>
    %17 = arith.subf %11, %16 : vector<2x512xf32>
    %18 = arith.mulf %17, %17 : vector<2x512xf32>
    %cst_9 = arith.constant dense<0.000000e+00> : vector<2xf32>
    %19 = vector.multi_reduction <add>, %18, %cst_9 [1] : vector<2x512xf32> to vector<2xf32>
    %20 = vector.shape_cast %19 : vector<2xf32> to vector<2x1xf32>
    %cst_10 = arith.constant 5.120000e+02 : f32
    %21 = vector.broadcast %cst_10 : f32 to vector<2x1xf32>
    %22 = arith.divf %20, %21 : vector<2x1xf32>
    %23 = vector.broadcast %15 : vector<2x1xf32> to vector<2x512xf32>
    %24 = arith.subf %11, %23 : vector<2x512xf32>
    %cst_11 = arith.constant 9.99999974E-6 : f32
    %25 = vector.broadcast %cst_11 : f32 to vector<2x1xf32>
    %26 = arith.addf %22, %25 : vector<2x1xf32>
    %27 = math.rsqrt %26 : vector<2x1xf32>
    %28 = vector.broadcast %27 : vector<2x1xf32> to vector<2x512xf32>
    %29 = arith.mulf %24, %28 : vector<2x512xf32>
    %30 = arith.truncf %29 : vector<2x512xf32> to vector<2x512xbf16>
    %c0_12 = arith.constant 0 : index
    %c0_13 = arith.constant 0 : index
    %31 = vector.load %arg3[%c0_12, %c0_13] : memref<512x128xbf16, #tpu.memory_space<vmem>>, vector<512x128xbf16>
    %cst_14 = arith.constant dense<0.000000e+00> : vector<2x128xf32>
    %32 = tpu.matmul %30, %31, %cst_14 {dimension_numbers = #tpu.dot_dimension_numbers<[1], [0], [0], [1], [0, 0, 1, 1], [], []>} : vector<2x512xbf16>, vector<512x128xbf16>, vector<2x128xf32> -> vector<2x128xf32>
    %c0_15 = arith.constant 0 : index
    %c0_16 = arith.constant 0 : index
    %33 = vector.load %arg4[%c0_15, %c0_16] : memref<1x128xf32, #tpu.memory_space<vmem>>, vector<1x128xf32>
    %34 = vector.broadcast %33 : vector<1x128xf32> to vector<2x128xf32>
    %35 = arith.addf %32, %34 : vector<2x128xf32>
    %cst_17 = arith.constant 0.000000e+00 : f32
    %36 = vector.broadcast %cst_17 : f32 to vector<2x128xf32>
    %37 = arith.cmpf ogt, %35, %36 : vector<2x128xf32>
    %cst_18 = arith.constant 2.000000e-01 : f32
    %38 = vector.broadcast %cst_18 : f32 to vector<2x128xf32>
    %39 = arith.mulf %38, %35 : vector<2x128xf32>
    %40 = arith.select %37, %35, %39 : vector<2x128xi1>, vector<2x128xf32>
    %cst_19 = arith.constant dense<0.000000e+00> : vector<2xf32>
    %41 = vector.multi_reduction <add>, %40, %cst_19 [1] : vector<2x128xf32> to vector<2xf32>
    %42 = vector.shape_cast %41 : vector<2xf32> to vector<2x1xf32>
    %cst_20 = arith.constant 1.280000e+02 : f32
    %43 = vector.broadcast %cst_20 : f32 to vector<2x1xf32>
    %44 = arith.divf %42, %43 : vector<2x1xf32>
    %45 = vector.broadcast %44 : vector<2x1xf32> to vector<2x128xf32>
    %46 = arith.subf %40, %45 : vector<2x128xf32>
    %47 = arith.mulf %46, %46 : vector<2x128xf32>
    %cst_21 = arith.constant dense<0.000000e+00> : vector<2xf32>
    %48 = vector.multi_reduction <add>, %47, %cst_21 [1] : vector<2x128xf32> to vector<2xf32>
    %49 = vector.shape_cast %48 : vector<2xf32> to vector<2x1xf32>
    %cst_22 = arith.constant 1.280000e+02 : f32
    %50 = vector.broadcast %cst_22 : f32 to vector<2x1xf32>
    %51 = arith.divf %49, %50 : vector<2x1xf32>
    %52 = vector.broadcast %44 : vector<2x1xf32> to vector<2x128xf32>
    %53 = arith.subf %40, %52 : vector<2x128xf32>
    %cst_23 = arith.constant 9.99999974E-6 : f32
    %54 = vector.broadcast %cst_23 : f32 to vector<2x1xf32>
    %55 = arith.addf %51, %54 : vector<2x1xf32>
    %56 = math.rsqrt %55 : vector<2x1xf32>
    %57 = vector.broadcast %56 : vector<2x1xf32> to vector<2x128xf32>
    %58 = arith.mulf %53, %57 : vector<2x128xf32>
    %c0_24 = arith.constant 0 : index
    %c0_25 = arith.constant 0 : index
    %59 = vector.load %arg5[%c0_24, %c0_25] : memref<128x4xf32, #tpu.memory_space<vmem>>, vector<128x4xf32>
    %cst_26 = arith.constant dense<0.000000e+00> : vector<2x4xf32>
    %60 = tpu.matmul %58, %59, %cst_26 {dimension_numbers = #tpu.dot_dimension_numbers<[1], [0], [0], [1], [0, 0, 1, 1], [], []>} : vector<2x128xf32>, vector<128x4xf32>, vector<2x4xf32> -> vector<2x4xf32>
    %c0_27 = arith.constant 0 : index
    %c0_28 = arith.constant 0 : index
    %61 = vector.load %arg6[%c0_27, %c0_28] : memref<1x4xf32, #tpu.memory_space<vmem>>, vector<1x4xf32>
    %62 = vector.broadcast %61 : vector<1x4xf32> to vector<2x4xf32>
    %63 = arith.addf %60, %62 : vector<2x4xf32>
    %c0_29 = arith.constant 0 : index
    %c0_30 = arith.constant 0 : index
    %64 = vector.load %arg7[%c0_29, %c0_30] : memref<2x4xf32, #tpu.memory_space<vmem>>, vector<2x4xf32>
    tpu.vector_store %arg7[%c0_29, %c0_30], %63 {strides = array<i32>} : memref<2x4xf32, #tpu.memory_space<vmem>>, vector<2x4xf32>,
    return
  }
}

</mosaic_0001>

<bundles_post_ra>
// kernel: _lambda_.1
= control target key start
LH: loop header
LB: loop body
LE: loop exit
PB: predicated region body
PF: predicated region fallthrough
CT: control target
= control target key end

     0   :  { %12 = vsyncpa [#allocation3], 0  ;;  %s1277_s0 = inlined_call_operand.vmem [shape: f32[2,65], index: 0, kind: input, shape index: {}]   ;;  %s1278_s1 = inlined_call_operand.vmem [shape: bf16[65,512], index: 1, kind: input, shape index: {}]   ;;  %s1279_s2 = inlined_call_operand.vmem [shape: f32[1,512], index: 2, kind: input, shape index: {}]   ;;  %s1280_s3 = inlined_call_operand.hbm [shape: bf16[512,128], index: 3, kind: input, shape index: {}]   ;;  %s1281_s4 = inlined_call_operand.vmem [shape: f32[1,128], index: 4, kind: input, shape index: {}]   ;;  %s1282_s5 = inlined_call_operand.vmem [shape: f32[128,4], index: 5, kind: input, shape index: {}]   ;;  %s1283_s6 = inlined_call_operand.vmem [shape: f32[1,4], index: 6, kind: input, shape index: {}]   ;;  %s1284_s7 = inlined_call_operand.hbm [shape: f32[2,4], index: 7, kind: output, shape index: {}]  }
   0x1   :  { %13 = vsyncpa [#allocation4], 0  ;;  %s24_s26 = sshll.u32 %s1280_s3, 4  ;;  %s1018_s27 = smov [#allocation2]   ;;  %s25_s26 = int_to_ptr.hbm [resolvable:$true] %s24_s26 }
   0x2   :  { %s26_s28 = sshll.u32 %s1018_s27, 4  ;;  %s1019_s29 = smov 64   ;;  %s27_s28 = int_to_ptr.vmem [resolvable:$true] %s26_s28 }
   0x3   :  { %s1020_s30 = smov 4  }
   0x4   :  { %32 = dma.hbm_to_vmem [thread:$0]  %s25_s26, 4096, %s27_s28, [#allocation3], %s1019_s29, %s1019_s29, %s1020_s30  }
   0x5   :  { %1014 = dma.done.wait [#allocation3], 4096  }
   0x6   :  { %1015 = vsyncadd [#allocation3], 4294963200  ;;  %vm168_vm0 = vcmask 1040384   ;;  %v62_v0 = vld [vmem:[%s1278_s1 + $0x80] sm:$0x11]  ;;  %v1021_v3 = vmov 0  }
   0x7   :  { %v124_v1 = vunpack.c.l.b16 %v62_v0  ;;  %v63_v2 = vld [vmem:[%s1278_s1 + $0x88] sm:$0x11]  ;;  %v1074_v4 = vsel %vm168_vm0, 65535, %v1021_v3  ;;  %v755_v8 = vld [vmem:[%s1278_s1 + $0x60] sm:$0xf]  ;;  %v125_v33 = vunpack.c.h.b16 %v62_v0  ;;  %vm164_vm1 = vcmask 531456  }
   0x8   :  { %v126_v5 = vunpack.c.l.b16 %v63_v2  ;;  %v127_v6 = vunpack.c.h.b16 %v63_v2  ;;  %v915_v9 = vld [vmem:[%s1278_s1 + $0x6c] sm:$0xf0]  ;;  %v763_v12 = vld [vmem:[%s1278_s1 + $0x68] sm:$0xf]  ;;  %v916_v14 = vld [vmem:[%s1278_s1 + $0x74] sm:$0xf0] }
   0x9   :  { %v144_v7 = vpack.c.b16 %v124_v1, %v124_v1  ;;  %v914_v15 = vld [vmem:[%s1278_s1 + $0x6c] sm:$0xf]  ;;  %v765_v16 = vld [vmem:[%s1278_s1 + $0x78] sm:$0xf0]  ;;  %v756_v19 = vor.u32 %v915_v9, %v755_v8  ;;  %v739_v20 = vld [vmem:[%s1278_s1 + $0x40] sm:$0xf]  ;;  %v764_v22 = vor.u32 %v916_v14, %v763_v12  ;;  %v145_v41 = vpack.c.b16 %v125_v33, %v125_v33 }
   0xa   :  { %v146_v10 = vpack.c.b16 %v126_v5, %v126_v5  ;;  %v147_v11 = vpack.c.b16 %v127_v6, %v127_v6  ;;  %v911_v21 = vld [vmem:[%s1278_s1 + $0x4c] sm:$0xf0]  ;;  %v768_v23 = vor.u32 %v914_v15, %v765_v16  ;;  %v747_v24 = vld [vmem:[%s1278_s1 + $0x48] sm:$0xf]  ;;  %v912_v25 = vld [vmem:[%s1278_s1 + $0x54] sm:$0xf0] }
   0xb   :  { %v172_v13 = vand.u32 %v1074_v4, %v144_v7  ;;  %v910_v26 = vld [vmem:[%s1278_s1 + $0x4c] sm:$0xf]  ;;  %v749_v27 = vld [vmem:[%s1278_s1 + $0x58] sm:$0xf0]  ;;  %v740_v28 = vor.u32 %v911_v21, %v739_v20  ;;  %v723_v29 = vld [vmem:[%s1278_s1 + $0x20] sm:$0xf]  ;;  %v748_v31 = vor.u32 %v912_v25, %v747_v24  ;;  %v175_v50 = vand.u32 %v1074_v4, %v145_v41 }
   0xc   :  { %v178_v17 = vand.u32 %v1074_v4, %v146_v10  ;;  %v181_v18 = vand.u32 %v1074_v4, %v147_v11  ;;  %v907_v30 = vld [vmem:[%s1278_s1 + $0x2c] sm:$0xf0]  ;;  %v752_v32 = vor.u32 %v910_v26, %v749_v27  ;;  %v731_v34 = vld [vmem:[%s1278_s1 + $0x28] sm:$0xf]  ;;  %v908_v35 = vld [vmem:[%s1278_s1 + $0x34] sm:$0xf0] }
   0xd   :  { %186 = vmatpush.bf16.msra.mxu1 %v172_v13  ;;  %v906_v36 = vld [vmem:[%s1278_s1 + $0x2c] sm:$0xf]  ;;  %v733_v37 = vld [vmem:[%s1278_s1 + $0x38] sm:$0xf0]  ;;  %v724_v38 = vor.u32 %v907_v30, %v723_v29  ;;  %v707_v39 = vld [vmem:[%s1278_s1] sm:$0xf]  ;;  %v732_v42 = vor.u32 %v908_v35, %v731_v34 }
   0xe   :  { %212 = vmatpush.bf16.msra.mxu2 %v178_v17  ;;  %225 = vmatpush.bf16.msra.mxu3 %v181_v18  ;;  %v903_v40 = vld [vmem:[%s1278_s1 + $0xc] sm:$0xf0]  ;;  %v736_v43 = vor.u32 %v906_v36, %v733_v37  ;;  %v715_v44 = vld [vmem:[%s1278_s1 + $0x8] sm:$0xf]  ;;  %v904_v45 = vld [vmem:[%s1278_s1 + $0x14] sm:$0xf0] }
   0xf   :  { %v902_v46 = vld [vmem:[%s1278_s1 + $0xc] sm:$0xf]  ;;  %v717_v47 = vld [vmem:[%s1278_s1 + $0x18] sm:$0xf0]  ;;  %v708_v48 = vor.u32 %v903_v40, %v707_v39  ;;  %v44_v49 = vld [vmem:[%s1277_s0] sm:$0x3]  ;;  %v716_v51 = vor.u32 %v904_v45, %v715_v44 }
  0x10   :  { %v913_v52 = vld [vmem:[%s1278_s1 + $0x64] sm:$0xf]  ;;  %v757_v53 = vld [vmem:[%s1278_s1 + $0x70] sm:$0xf0]  ;;  %v720_v54 = vor.u32 %v902_v46, %v717_v47  ;;  %v45_v55 = vpack.c.bf16 %v44_v49, %v44_v49  ;;  %v64_v3 = vld [vmem:[%s1279_s2] sm:$0xf] }
  0x11   :  { %187 = vmatpush.bf16.msra.mxu1 %v756_v19  ;;  %v760_v56 = vor.u32 %v913_v52, %v757_v53  ;;  %v909_v57 = vld [vmem:[%s1278_s1 + $0x44] sm:$0xf]  ;;  %v741_v58 = vld [vmem:[%s1278_s1 + $0x50] sm:$0xf0]  ;;  %v66_v5 = vperm.slane %v64_v3, 0  ;;  %v68_v8 = vperm.slane %v64_v3, 2 }
  0x12   :  { %213 = vmatpush.bf16.msra.mxu2 %v764_v22  ;;  %226 = vmatpush.bf16.msra.mxu3 %v768_v23  ;;  %v744_v59 = vor.u32 %v909_v57, %v741_v58  ;;  %v905_v60 = vld [vmem:[%s1278_s1 + $0x24] sm:$0xf]  ;;  %v725_v61 = vld [vmem:[%s1278_s1 + $0x30] sm:$0xf0]  ;;  %v69_v10 = vperm.slane %v64_v3, 3  ;;  %v67_v12 = vperm.slane %v64_v3, 1 }
  0x13   :  { %v728_v62 = vor.u32 %v905_v60, %v725_v61  ;;  %v901_v63 = vld [vmem:[%s1278_s1 + $0x4] sm:$0xf]  ;;  %v709_v0 = vld [vmem:[%s1278_s1 + $0x10] sm:$0xf0]  ;;  %vm247_vm4 = vcmask 1041408   ;;  %v1022_v34 = vmov 512.0  }
  0x14   :  { %v712_v1 = vor.u32 %v901_v63, %v709_v0  ;;  %958 = vrcp.f32 %v1022_v34  ;;  %v924_v37 = vld [vmem:[#allocation2 + $0x38] sm:$0xff]  ;;  %v923_v41 = vld [vmem:[#allocation2 + $0x30] sm:$0xff]  ;;  %v930_v3 = vld [vmem:[#allocation2 + $0x68] sm:$0xff]  ;;  %s1024_s11 = smov [#allocation5]   ;;  %s695_s14 = sshll.u32 %s1284_s7, 4  ;;  %vm686_vm0 = vcmask 25600   ;;  %s696_s14 = int_to_ptr.hbm [resolvable:$true] %s695_s14 }
  0x15   :  { %188 = vmatpush.bf16.msra.mxu1 %v740_v28  ;;  %v940_v39 = vld [vmem:[#allocation2 + $0xb8] sm:$0xff]  ;;  %562 = vmatpush.bf16.msra.mxu0 %v924_v37  ;;  %v947_v44 = vld [vmem:[#allocation2 + $0xf0] sm:$0xff]  ;;  %s693_s3 = sshll.u32 %s1024_s11, 4  ;;  %s694_s3 = int_to_ptr.vmem [resolvable:$true] %s693_s3 }
  0x16   :  { %214 = vmatpush.bf16.msra.mxu2 %v748_v31  ;;  %227 = vmatpush.bf16.msra.mxu3 %v752_v32  ;;  %v948_v40 = vld [vmem:[#allocation2 + $0xf8] sm:$0xff] }
  0x19   :  { %189 = vmatpush.bf16.msra.mxu1 %v724_v38  ;;  %v932_v38 = vld [vmem:[#allocation2 + $0x78] sm:$0xff]  ;;  %563 = vmatpush.bf16.msra.mxu0 %v923_v41 }
  0x1a   :  { %215 = vmatpush.bf16.msra.mxu2 %v732_v42  ;;  %228 = vmatpush.bf16.msra.mxu3 %v736_v43  ;;  %v959_v35 = vpop.eup %958  ;;  %v931_v42 = vld [vmem:[#allocation2 + $0x70] sm:$0xff] }
  0x1b   :  { %v258_v36 = vmul.f32 512.0, %v959_v35  ;;  %v939_v43 = vld [vmem:[#allocation2 + $0xb0] sm:$0xff]  ;;  %vm262_vm7 = vweird.f32 %v959_v35 }
  0x1d   :  { %190 = vmatpush.bf16.msra.mxu1 %v708_v48  ;;  %v259_v45 = vsub.f32 1.0, %v258_v36 }
  0x1e   :  { %216 = vmatpush.bf16.msra.mxu2 %v716_v51  ;;  %229 = vmatpush.bf16.msra.mxu3 %v720_v54 }
  0x1f   :  { %v260_v46 = vmul.f32 %v959_v35, %v259_v45 }
  0x20   :  { %769 = vmatmul.msk.bf16.vlgmr.msra.gmra.mxu1 %vm164_vm1, %v45_v55 }
  0x21   :  { %199 = vmatpush.bf16.msrb.mxu1 %v175_v50  ;;  %771 = vmatmul.msk.bf16.vlgmr.msra.gmra.mxu2 %vm164_vm1, %v45_v55  ;;  %v261_v47 = vadd.f32 %v959_v35, %v260_v46 }
  0x22   :  { %772 = vmatmul.msk.bf16.vlgmr.msra.gmra.mxu3 %vm164_vm1, %v45_v55  ;;  %588 = vmatpush.bf16.msrb.mxu2 %v940_v39 }
  0x23   :  { %601 = vmatpush.bf16.msrb.mxu3 %v948_v40  ;;  %v1190_v48 = vsel %vm262_vm7, %v959_v35, %v261_v47 }
  0x25   :  { %200 = vmatpush.bf16.msrb.mxu1 %v760_v56 }
  0x26   :  { %589 = vmatpush.bf16.msrb.mxu2 %v939_v43 }
  0x27   :  { %602 = vmatpush.bf16.msrb.mxu3 %v947_v44  ;;  %v956_v44 = vld [vmem:[%s1281_s4] ss:$0 sm:$0xff] }
  0x29   :  { %201 = vmatpush.bf16.msrb.mxu1 %v744_v59 }
  0x2d   :  { %202 = vmatpush.bf16.msrb.mxu1 %v728_v62 }
  0x31   :  { %203 = vmatpush.bf16.msrb.mxu1 %v712_v1 }
  0x34   :  { %770 = vmatmul.msk.bf16.vlgmr.msrb.gmra.mxu1 %vm164_vm1, %v45_v55 }
  0x35   :  { %575 = vmatpush.bf16.msra.mxu1 %v932_v38 }
  0x39   :  { %576 = vmatpush.bf16.msra.mxu1 %v931_v42 }
  0x3d   :  { %577 = vmatpush.bf16.msra.mxu1 %v930_v3 }
  0x9d   :  { %v192_v2 = vpop.f32.mrf.mxu1 }
  0x9e   :  { %v193_v9 = vadd.f32 %v192_v2, %v66_v5  ;;  %v922_v2 = vld [vmem:[#allocation2 + $0x28] sm:$0xff] }
  0x9f   :  { %v946_v5 = vld [vmem:[#allocation2 + $0xe8] sm:$0xff]  ;;  %564 = vmatpush.bf16.msra.mxu0 %v922_v2 }
  0xa0   :  { %v239_v14 = vmul.f32 0.2, %v193_v9  ;;  %vm235_vm2 = vcmp.gt.f32.partialorder %v193_v9, 0.0  ;;  %603 = vmatpush.bf16.msrb.mxu3 %v946_v5 }
  0xa2   :  { %v243_v20 = vsel %vm235_vm2, %v193_v9, %v239_v14  ;;  %v945_v9 = vld [vmem:[#allocation2 + $0xe0] sm:$0xff]  ;;  %v919_v14 = vld [vmem:[#allocation2 + $0x10] sm:$0xff] }
  0xa3   :  { %v248_v25 = vsel %vm247_vm4, %v243_v20, 0.0 }
  0xa4   :  { %v218_v4 = vpop.f32.mrf.mxu2  ;;  %604 = vmatpush.bf16.msrb.mxu3 %v945_v9 }
  0xa5   :  { %v194_v6 = vpop.f32.mrf.mxu1  ;;  %v231_v7 = vpop.f32.mrf.mxu3  ;;  %v219_v11 = vadd.f32 %v218_v4, %v68_v8  ;;  %v938_v4 = vld [vmem:[#allocation2 + $0xa8] sm:$0xff]  ;;  %v937_v8 = vld [vmem:[#allocation2 + $0xa0] sm:$0xff] }
  0xa6   :  { %v232_v15 = vadd.f32 %v231_v7, %v69_v10  ;;  %590 = vmatpush.bf16.msrb.mxu2 %v938_v4  ;;  %v921_v6 = vld [vmem:[#allocation2 + $0x20] sm:$0xff]  ;;  %v920_v10 = vld [vmem:[#allocation2 + $0x18] sm:$0xff] }
  0xa7   :  { %v241_v18 = vmul.f32 0.2, %v219_v11  ;;  %vm237_vm3 = vcmp.gt.f32.partialorder %v219_v11, 0.0  ;;  %v929_v7 = vld [vmem:[#allocation2 + $0x60] sm:$0xff]  ;;  %565 = vmatpush.bf16.msra.mxu0 %v921_v6 }
  0xa8   :  { %v242_v21 = vmul.f32 0.2, %v232_v15  ;;  %vm238_vm6 = vcmp.gt.f32.partialorder %v232_v15, 0.0  ;;  %578 = vmatpush.bf16.msra.mxu1 %v929_v7 }
  0xa9   :  { %v245_v24 = vsel %vm237_vm3, %v219_v11, %v241_v18  ;;  %v928_v11 = vld [vmem:[#allocation2 + $0x58] sm:$0xff]  ;;  %v918_v18 = vld [vmem:[#allocation2 + $0x8] sm:$0xff] }
  0xaa   :  { %v246_v27 = vsel %vm238_vm6, %v232_v15, %v242_v21  ;;  %v251_v30 = vsel %vm247_vm4, %v245_v24, 0.0  ;;  %591 = vmatpush.bf16.msrb.mxu2 %v937_v8  ;;  %v927_v15 = vld [vmem:[#allocation2 + $0x50] sm:$0xff]  ;;  %v942_v21 = vld [vmem:[#allocation2 + $0xc8] sm:$0xff] }
  0xab   :  { %v253_v32 = vsel %vm247_vm4, %v246_v27, 0.0  ;;  %566 = vmatpush.bf16.msra.mxu0 %v920_v10 }
  0xac   :  { %v220_v13 = vpop.f32.mrf.mxu2  ;;  %579 = vmatpush.bf16.msra.mxu1 %v928_v11 }
  0xad   :  { %v233_v16 = vpop.f32.mrf.mxu3  ;;  %v944_v13 = vld [vmem:[#allocation2 + $0xd8] sm:$0xff] }
  0xae   :  { %605 = vmatpush.bf16.msrb.mxu3 %v944_v13  ;;  %v935_v16 = vld [vmem:[#allocation2 + $0x90] sm:$0xff] }
  0xaf   :  { %567 = vmatpush.bf16.msra.mxu0 %v919_v14  ;;  %v656_v13 = vld [vmem:[%s1282_s5 + $0x50] sm:$0xff]  ;;  %v655_v14 = vld [vmem:[%s1282_s5 + $0x48] sm:$0xff] }
  0xb0   :  { %580 = vmatpush.bf16.msra.mxu1 %v927_v15  ;;  %v654_v15 = vld [vmem:[%s1282_s5 + $0x40] sm:$0xff] }
  0xb1   :  { %v205_v17 = vpop.f32.mrf.mxu1 }
  0xb2   :  { %v206_v19 = vadd.f32 %v205_v17, %v67_v12  ;;  %v936_v12 = vld [vmem:[#allocation2 + $0x98] sm:$0xff]  ;;  %v943_v17 = vld [vmem:[#allocation2 + $0xd0] sm:$0xff] }
  0xb3   :  { %592 = vmatpush.bf16.msrb.mxu2 %v936_v12  ;;  %606 = vmatpush.bf16.msrb.mxu3 %v943_v17  ;;  %v657_v12 = vld [vmem:[%s1282_s5 + $0x58] sm:$0xff]  ;;  %v652_v17 = vld [vmem:[%s1282_s5 + $0x30] sm:$0xff] }
  0xb4   :  { %vm236_vm5 = vcmp.gt.f32.partialorder %v206_v19, 0.0  ;;  %v240_v22 = vmul.f32 0.2, %v206_v19  ;;  %568 = vmatpush.bf16.msra.mxu0 %v918_v18  ;;  %v651_v18 = vld [vmem:[%s1282_s5 + $0x28] sm:$0xff] }
  0xb6   :  { %v244_v23 = vsel %vm236_vm5, %v206_v19, %v240_v22  ;;  %v926_v19 = vld [vmem:[#allocation2 + $0x48] sm:$0xff]  ;;  %v917_v22 = vld [vmem:[#allocation2] sm:$0xff] }
  0xb7   :  { %v249_v26 = vsel %vm247_vm4, %v244_v23, 0.0  ;;  %593 = vmatpush.bf16.msrb.mxu2 %v935_v16  ;;  %581 = vmatpush.bf16.msra.mxu1 %v926_v19  ;;  %v653_v16 = vld [vmem:[%s1282_s5 + $0x38] sm:$0xff]  ;;  %v650_v19 = vld [vmem:[%s1282_s5 + $0x20] sm:$0xff] }
  0xb8   :  { %v250_v28 = vadd.f32 %v249_v26, %v248_v25  ;;  %607 = vmatpush.bf16.msrb.mxu3 %v942_v21  ;;  %v941_v25 = vld [vmem:[#allocation2 + $0xc0] sm:$0xff]  ;;  %569 = vmatpush.bf16.msra.mxu0 %v917_v22  ;;  %v648_v21 = vld [vmem:[%s1282_s5 + $0x10] sm:$0xff]  ;;  %v647_v22 = vld [vmem:[%s1282_s5 + $0x8] sm:$0xff] }
  0xb9   :  { %v207_v29 = vpop.f32.mrf.mxu1 }
  0xba   :  { %v252_v31 = vadd.f32 %v251_v30, %v250_v28 }
  0xbc   :  { %v254_v33 = vadd.f32 %v253_v32, %v252_v31  ;;  %608 = vmatpush.bf16.msrb.mxu3 %v941_v25 }
  0xbe   :  { %255 = vadd.xlane.f32.xlu0 %v254_v33 }
 0x131   :  { %v256_v49 = vpop.xlane.xlu0 %255 }
 0x132   :  { %v264_v50 = vmul.f32 %v1190_v48, %v256_v49 }
 0x134   :  { %v1193_v51 = vsub.f32 %v243_v20, %v264_v50  ;;  %v1195_v52 = vsub.f32 %v244_v23, %v264_v50  ;;  %v1197_v53 = vsub.f32 %v245_v24, %v264_v50  ;;  %v1199_v54 = vsub.f32 %v246_v27, %v264_v50  ;;  %v934_v20 = vld [vmem:[#allocation2 + $0x88] sm:$0xff]  ;;  %v925_v23 = vld [vmem:[#allocation2 + $0x40] sm:$0xff] }
 0x135   :  { %594 = vmatpush.bf16.msrb.mxu2 %v934_v20  ;;  %v933_v24 = vld [vmem:[#allocation2 + $0x80] sm:$0xff]  ;;  %582 = vmatpush.bf16.msra.mxu1 %v925_v23  ;;  %v649_v20 = vld [vmem:[%s1282_s5 + $0x18] sm:$0xff] }
 0x136   :  { %v269_v55 = vmul.f32 %v1193_v51, %v1193_v51  ;;  %v270_v56 = vmul.f32 %v1195_v52, %v1195_v52  ;;  %v271_v57 = vmul.f32 %v1197_v53, %v1197_v53  ;;  %v272_v58 = vmul.f32 %v1199_v54, %v1199_v54  ;;  %v646_v23 = vld [vmem:[%s1282_s5] sm:$0xff] }
 0x138   :  { %v273_v59 = vsel %vm247_vm4, %v269_v55, 0.0  ;;  %v274_v60 = vsel %vm247_vm4, %v270_v56, 0.0  ;;  %v276_v62 = vsel %vm247_vm4, %v271_v57, 0.0  ;;  %v278_v0 = vsel %vm247_vm4, %v272_v58, 0.0 }
 0x139   :  { %v275_v61 = vadd.f32 %v274_v60, %v273_v59  ;;  %595 = vmatpush.bf16.msrb.mxu2 %v933_v24  ;;  %v1023_v60 = vmov 128.0  }
 0x13b   :  { %v277_v63 = vadd.f32 %v276_v62, %v275_v61  ;;  %v661_v61 = vld [vmem:[%s1282_s5 + $0x78] sm:$0xff]  ;;  %v660_v62 = vld [vmem:[%s1282_s5 + $0x70] sm:$0xff] }
 0x13c   :  { %666 = vmatpush.msrb.mxu0 %v661_v61 }
 0x13d   :  { %v279_v1 = vadd.f32 %v278_v0, %v277_v63  ;;  %v659_v63 = vld [vmem:[%s1282_s5 + $0x68] sm:$0xff] }
 0x13e   :  { %667 = vmatpush.msrb.mxu0 %v660_v62 }
 0x13f   :  { %280 = vadd.xlane.f32.xlu0 %v279_v1  ;;  %v658_v1 = vld [vmem:[%s1282_s5 + $0x60] sm:$0xff] }
 0x140   :  { %668 = vmatpush.msrb.mxu0 %v659_v63 }
 0x142   :  { %669 = vmatpush.msrb.mxu0 %v658_v1 }
 0x144   :  { %670 = vmatpush.msrb.mxu0 %v657_v12 }
 0x146   :  { %671 = vmatpush.msrb.mxu0 %v656_v13 }
 0x148   :  { %672 = vmatpush.msrb.mxu0 %v655_v14 }
 0x14a   :  { %673 = vmatpush.msrb.mxu0 %v654_v15 }
 0x14c   :  { %674 = vmatpush.msrb.mxu0 %v653_v16 }
 0x14e   :  { %675 = vmatpush.msrb.mxu0 %v652_v17 }
 0x150   :  { %676 = vmatpush.msrb.mxu0 %v651_v18 }
 0x152   :  { %677 = vmatpush.msrb.mxu0 %v650_v19 }
 0x154   :  { %678 = vmatpush.msrb.mxu0 %v649_v20 }
 0x156   :  { %679 = vmatpush.msrb.mxu0 %v648_v21 }
 0x158   :  { %680 = vmatpush.msrb.mxu0 %v647_v22 }
 0x15a   :  { %681 = vmatpush.msrb.mxu0 %v646_v23 }
 0x1b2   :  { %v281_v26 = vpop.xlane.xlu0 %280 }
 0x1b3   :  { %v282_v27 = vmul.f32 %v281_v26, %v1190_v48 }
 0x1b5   :  { %v283_v28 = vadd.f32 1e-05, %v282_v27 }
 0x1b7   :  { %960 = vrsqrt.f32 %v283_v28  ;;  %vm290_vm9 = vweird.f32 %v283_v28 }
 0x1b8   :  { %962 = vrcp.f32 %v1023_v60 }
 0x1bd   :  { %v961_v29 = vpop.eup %960 }
 0x1be   :  { %v285_v30 = vmul.f32 %v961_v29, %v283_v28  ;;  %vm291_vm8 = vweird.f32 %v961_v29  ;;  %v963_v0 = vpop.eup %962 }
 0x1bf   :  { %vm292_vm10 = vmor %vm290_vm9, %vm291_vm8  ;;  %v621_v2 = vmul.f32 128.0, %v963_v0  ;;  %vm625_vm12 = vweird.f32 %v963_v0 }
 0x1c0   :  { %v286_v31 = vmul.f32 %v961_v29, %v285_v30 }
 0x1c1   :  { %v622_v3 = vsub.f32 1.0, %v621_v2 }
 0x1c2   :  { %v287_v32 = vmul.f32 0.5, %v286_v31 }
 0x1c3   :  { %v623_v4 = vmul.f32 %v963_v0, %v622_v3 }
 0x1c4   :  { %v288_v33 = vsub.f32 1.5, %v287_v32 }
 0x1c5   :  { %v624_v5 = vadd.f32 %v963_v0, %v623_v4 }
 0x1c6   :  { %v289_v34 = vmul.f32 %v961_v29, %v288_v33 }
 0x1c7   :  { %v626_v6 = vsel %vm625_vm12, %v963_v0, %v624_v5 }
 0x1c8   :  { %v293_v35 = vsel %vm292_vm10, %v961_v29, %v289_v34 }
 0x1c9   :  { %v294_v36 = vmul.f32 %v293_v35, %v1193_v51  ;;  %v295_v37 = vmul.f32 %v293_v35, %v1195_v52  ;;  %v296_v38 = vmul.f32 %v293_v35, %v1197_v53  ;;  %v297_v39 = vmul.f32 %v293_v35, %v1199_v54  ;;  %v957_v35 = vld [vmem:[%s1283_s6] ss:$0 sm:$0xff] }
 0x1cb   :  { %v298_v40 = vpack.c.bf16 %v294_v36, %v294_v36  ;;  %v299_v41 = vpack.c.bf16 %v295_v37, %v295_v37  ;;  %v300_v42 = vpack.c.bf16 %v296_v38, %v296_v38  ;;  %v301_v43 = vpack.c.bf16 %v297_v39, %v297_v39 }
 0x1cd   :  { %570 = vmatmul.bf16.vlgmr.msra.gmra.mxu0 %v298_v40  ;;  %583 = vmatmul.bf16.vlgmr.msra.gmra.mxu1 %v299_v41 }
 0x1ce   :  { %596 = vmatmul.bf16.vlgmr.msrb.gmra.mxu2 %v300_v42  ;;  %609 = vmatmul.bf16.vlgmr.msrb.gmra.mxu3 %v301_v43 }
 0x24a   :  { %v571_v45 = vpop.f32.mrf.mxu0  ;;  %v584_v46 = vpop.f32.mrf.mxu1 }
 0x24b   :  { %v572_v47 = vadd.f32 %v956_v44, %v571_v45 }
 0x24d   :  { %v585_v48 = vadd.f32 %v584_v46, %v572_v47 }
 0x251   :  { %v597_v49 = vpop.f32.mrf.mxu2  ;;  %v610_v50 = vpop.f32.mrf.mxu3 }
 0x252   :  { %v598_v51 = vadd.f32 %v597_v49, %v585_v48  ;;  %v573_v52 = vpop.f32.mrf.mxu0  ;;  %v586_v53 = vpop.f32.mrf.mxu1 }
 0x254   :  { %v611_v54 = vadd.f32 %v610_v50, %v598_v51 }
 0x256   :  { %v615_v55 = vmul.f32 0.2, %v611_v54  ;;  %vm614_vm11 = vcmp.gt.f32.partialorder %v611_v54, 0.0 }
 0x258   :  { %v616_v56 = vsel %vm614_vm11, %v611_v54, %v615_v55 }
 0x259   :  { %v599_v57 = vpop.f32.mrf.mxu2  ;;  %v612_v58 = vpop.f32.mrf.mxu3  ;;  %v617_v59 = vsel %vm247_vm4, %v616_v56, 0.0 }
 0x25a   :  { %618 = vadd.xlane.f32.xlu1 %v617_v59 }
 0x2cd   :  { %v619_v7 = vpop.xlane.xlu1 %618 }
 0x2ce   :  { %v627_v8 = vmul.f32 %v626_v6, %v619_v7 }
 0x2d0   :  { %v628_v9 = vsub.f32 %v616_v56, %v627_v8 }
 0x2d2   :  { %v629_v10 = vmul.f32 %v628_v9, %v628_v9 }
 0x2d4   :  { %v630_v11 = vsel %vm247_vm4, %v629_v10, 0.0 }
 0x2d5   :  { %631 = vadd.xlane.f32.xlu1 %v630_v11 }
 0x348   :  { %v632_v24 = vpop.xlane.xlu1 %631 }
 0x349   :  { %v633_v25 = vmul.f32 %v632_v24, %v626_v6 }
 0x34b   :  { %v634_v26 = vadd.f32 1e-05, %v633_v25 }
 0x34d   :  { %964 = vrsqrt.f32 %v634_v26  ;;  %vm641_vm14 = vweird.f32 %v634_v26 }
 0x353   :  { %v965_v27 = vpop.eup %964 }
 0x354   :  { %v636_v28 = vmul.f32 %v965_v27, %v634_v26  ;;  %vm642_vm13 = vweird.f32 %v965_v27 }
 0x355   :  { %vm643_vm15 = vmor %vm641_vm14, %vm642_vm13 }
 0x356   :  { %v637_v29 = vmul.f32 %v965_v27, %v636_v28 }
 0x358   :  { %v638_v30 = vmul.f32 0.5, %v637_v29 }
 0x35a   :  { %v639_v31 = vsub.f32 1.5, %v638_v30 }
 0x35c   :  { %v640_v32 = vmul.f32 %v965_v27, %v639_v31 }
 0x35e   :  { %v644_v33 = vsel %vm643_vm15, %v965_v27, %v640_v32 }
 0x35f   :  { %v645_v34 = vmul.f32 %v644_v33, %v628_v9 }
 0x361   :  { %682 = vmatmul.f32.vlgmr.msrb.gmra.mxu0 %v645_v34 }
 0x3de   :  { %v683_v36 = vpop.f32.mrf.mxu0 }
 0x3df   :  { %v684_v37 = vadd.f32 %v957_v35, %v683_v36 }
 0x3e1   :  { %687 = vst.msk [vmem:[#allocation5] sm:$0x3] %vm686_vm0, %v684_v37 }
 0x3e2   :  { %698 = dma.vmem_to_hbm [thread:$0]  %s694_s3, 32, %s696_s14, [#allocation4]  }
 0x3e3   :  { %1016 = dma.done.wait [#allocation4], 32  }
 0x3e4   :  { %1017 = vsyncadd [#allocation4], 4294967264 }
 0x3e5   :  { %703 = vsyncpa [#allocation3], 1 }
 0x3e6   :  { %704 = vsyncpa [#allocation4], 1 }

</bundles_post_ra>
